<compile_context>
chip_gen: v6e
topology: v6e:2x2x1
jax: 0.10.0
libtpu: 0.0.40
codegen_flags: <defaults>
</compile_context>

<pallas_src>
import functools

import jax
import jax.numpy as jnp
from jax.experimental import pallas as pl
from jax.experimental.pallas import tpu as pltpu


def _pick_tile(dim, target, align):
    """Largest tile <= target that divides dim and is `align`-aligned, else the full dim."""
    if dim <= target:
        return dim
    t = (target // align) * align
    while t >= align:
        if dim % t == 0:
            return t
        t -= align
    return dim


# ----------------------------------------------------------------------------
# Kernel 1: base QWenMLP, tiled over (token tiles, F reduction tiles)
# ----------------------------------------------------------------------------
def _base_mlp_kernel(x_ref, w1_ref, w2_ref, wc_ref, o_ref, acc_ref):
    f = pl.program_id(1)

    @pl.when(f == 0)
    def _():
        acc_ref[...] = jnp.zeros_like(acc_ref)

    x = x_ref[...]
    a1 = jnp.dot(x, w1_ref[...], preferred_element_type=jnp.float32)
    a2 = jnp.dot(x, w2_ref[...], preferred_element_type=jnp.float32)
    # SwiGLU: a1 * silu(a2); sigmoid stays on the EUP slot, cast once to bf16 for c_proj.
    inter = (a1 * (a2 * jax.nn.sigmoid(a2))).astype(wc_ref.dtype)
    acc_ref[...] += jnp.dot(inter, wc_ref[...], preferred_element_type=jnp.float32)

    @pl.when(f == pl.num_programs(1) - 1)
    def _():
        o_ref[...] = acc_ref[...].astype(o_ref.dtype)


def base_mlp(x, w1, w2, wc, *, tm_target=256, tf_target=512):
    T, H = x.shape
    F = w1.shape[1]
    tm = _pick_tile(T, tm_target, 8)
    tf = _pick_tile(F, tf_target, 128)
    grid = (T // tm, F // tf)
    return pl.pallas_call(
        _base_mlp_kernel,
        out_shape=jax.ShapeDtypeStruct((T, H), x.dtype),
        grid_spec=pltpu.PrefetchScalarGridSpec(
            num_scalar_prefetch=0,
            grid=grid,
            in_specs=[
                pl.BlockSpec((tm, H), lambda i, f: (i, 0)),   # x token tile (resident over F)
                pl.BlockSpec((H, tf), lambda i, f: (0, f)),   # w1 column tile
                pl.BlockSpec((H, tf), lambda i, f: (0, f)),   # w2 column tile
                pl.BlockSpec((tf, H), lambda i, f: (f, 0)),   # c_proj row tile
            ],
            out_specs=pl.BlockSpec((tm, H), lambda i, f: (i, 0)),
            scratch_shapes=[pltpu.VMEM((tm, H), jnp.float32)],
        ),
        compiler_params=pltpu.CompilerParams(
            dimension_semantics=("parallel", "arbitrary"),
            vmem_limit_bytes=48 * 1024 * 1024,
        ),
    )(x, w1, w2, wc)


# ----------------------------------------------------------------------------
# Kernel 2: MoE of LoRA experts (packed across experts) + fused base add
# ----------------------------------------------------------------------------
def _moe_lora_kernel(x_ref, base_ref, gates_ref, a1_ref, b1_ref, a2_ref, b2_ref,
                     ac_ref, bc_ref, o_ref, *, num_experts, rank, scaling):
    x = x_ref[...]
    cdt = x.dtype                              # bf16 carrier dtype for MXU inputs
    # One wide MXU matmul per packed A matrix covers all experts' down-projections.
    xa1 = jnp.dot(x, a1_ref[...], preferred_element_type=jnp.float32)   # [tm, E*R]
    xa2 = jnp.dot(x, a2_ref[...], preferred_element_type=jnp.float32)
    b1 = b1_ref[...]
    b2 = b2_ref[...]
    ac = ac_ref[...]
    bc = bc_ref[...]
    gates = gates_ref[...]                     # [tm, GE] f32, lane-dense
    acc = base_ref[...].astype(jnp.float32)    # fused base_output + moe accumulation
    for e in range(num_experts):               # static unroll; all slices are static
        lo, hi = e * rank, (e + 1) * rank
        h1 = jnp.dot(xa1[:, lo:hi].astype(cdt), b1[lo:hi, :],
                     preferred_element_type=jnp.float32) * scaling
        h2 = jnp.dot(xa2[:, lo:hi].astype(cdt), b2[lo:hi, :],
                     preferred_element_type=jnp.float32) * scaling
        inter = (h1 * (h2 * jax.nn.sigmoid(h2))).astype(cdt)            # lora_a1 * silu(lora_a2)
        ca = jnp.dot(inter, ac[:, lo:hi], preferred_element_type=jnp.float32)   # [tm, R]
        gate = gates[:, e:e + 1]                                        # [tm, 1]
        ca = (ca * (gate * scaling)).astype(cdt)                        # fold gate*scaling in rank space
        acc = acc + jnp.dot(ca, bc[lo:hi, :], preferred_element_type=jnp.float32)
    o_ref[...] = acc.astype(o_ref.dtype)


def moe_lora_fused(x, base, gates, a1, b1, a2, b2, ac, bc, *,
                   num_experts, rank, scaling, tm_target=256):
    T, H = x.shape
    ER = a1.shape[1]
    F = b1.shape[1]
    GE = gates.shape[1]
    tm = _pick_tile(T, tm_target, 8)
    grid = (T // tm,)
    kern = functools.partial(_moe_lora_kernel, num_experts=num_experts,
                             rank=rank, scaling=scaling)
    return pl.pallas_call(
        kern,
        out_shape=jax.ShapeDtypeStruct((T, H), x.dtype),
        grid_spec=pltpu.PrefetchScalarGridSpec(
            num_scalar_prefetch=0,
            grid=grid,
            in_specs=[
                pl.BlockSpec((tm, H), lambda i: (i, 0)),    # x token tile
                pl.BlockSpec((tm, H), lambda i: (i, 0)),    # base_output token tile
                pl.BlockSpec((tm, GE), lambda i: (i, 0)),   # gates (lane-dense, 128-padded)
                pl.BlockSpec((H, ER), lambda i: (0, 0)),    # A1 packed across experts
                pl.BlockSpec((ER, F), lambda i: (0, 0)),    # B1 packed
                pl.BlockSpec((H, ER), lambda i: (0, 0)),    # A2 packed
                pl.BlockSpec((ER, F), lambda i: (0, 0)),    # B2 packed
                pl.BlockSpec((F, ER), lambda i: (0, 0)),    # Ac packed
                pl.BlockSpec((ER, H), lambda i: (0, 0)),    # Bc packed
            ],
            out_specs=pl.BlockSpec((tm, H), lambda i: (i, 0)),
        ),
        compiler_params=pltpu.CompilerParams(
            dimension_semantics=("parallel",),
            vmem_limit_bytes=48 * 1024 * 1024,
        ),
    )(x, base, gates, a1, b1, a2, b2, ac, bc)


# ----------------------------------------------------------------------------
# Full forward (router, top-k routing, aux loss, reshapes stay in plain XLA)
# ----------------------------------------------------------------------------
def moe_lora_qwen_mlp_forward(hidden_states, params, *, top_k, scaling):
    B, S, H = hidden_states.shape
    T = B * S
    x = hidden_states.reshape(T, H)

    # Kernel 1: frozen base QWenMLP.
    base_out = base_mlp(x, params["w1"], params["w2"], params["c_proj"])

    # Router: tiny [T,H]@[H,E] GEMM + dense top-k softmax routing (f32 in XLA).
    logits = jnp.dot(x.astype(jnp.float32), params["wg"].astype(jnp.float32))
    E = logits.shape[1]
    probs = jax.nn.softmax(logits, axis=-1)
    topk_vals, topk_idx = jax.lax.top_k(probs, top_k)
    norm_vals = topk_vals / jnp.sum(topk_vals, axis=-1, keepdims=True)
    one_hot = jax.nn.one_hot(topk_idx, E, dtype=jnp.float32)          # [T,k,E]
    gates_dense = jnp.einsum("tk,tke->te", norm_vals, one_hot)        # [T,E]
    GE = -(-E // 128) * 128                                           # pad to lane-dense width
    gates_padded = jnp.pad(gates_dense, ((0, 0), (0, GE - E)))

    # Pack LoRA weights across experts (runs once under jit; production would pre-pack).
    A1, B1 = params["lora_w1_A"], params["lora_w1_B"]
    A2, B2 = params["lora_w2_A"], params["lora_w2_B"]
    Ac, Bc = params["lora_c_A"], params["lora_c_B"]
    E_, H_, R = A1.shape
    F = B1.shape[2]
    a1_all = A1.transpose(1, 0, 2).reshape(H, E_ * R)    # [H, E*R]
    a2_all = A2.transpose(1, 0, 2).reshape(H, E_ * R)
    b1_all = B1.reshape(E_ * R, F)                       # [E*R, F]
    b2_all = B2.reshape(E_ * R, F)
    ac_all = Ac.transpose(1, 0, 2).reshape(F, E_ * R)    # [F, E*R]
    bc_all = Bc.reshape(E_ * R, H)                       # [E*R, H]

    # Kernel 2: MoE of LoRA experts with base_out fused into the accumulator.
    combined = moe_lora_fused(
        x, base_out, gates_padded,
        a1_all, b1_all, a2_all, b2_all, ac_all, bc_all,
        num_experts=E_, rank=R, scaling=scaling)
    combined = combined.reshape(B, S, H)

    # aux loss (deepspeed-style load-balancing on the top-1 assignment)
    me = jnp.mean(probs, axis=0)
    ce = jnp.mean(one_hot[:, 0, :], axis=0)
    aux_loss = E * jnp.sum(me * ce)
    exp_counts = jnp.sum(one_hot, axis=(0, 1)).astype(jnp.int32)

    return combined, aux_loss, exp_counts, logits.reshape(B, S, E)


# ----------------------------------------------------------------------------
# Pure-JAX f32 reference (for a bf16-tolerance correctness check)
# ----------------------------------------------------------------------------
def reference_forward(hidden_states, params, *, top_k, scaling):
    B, S, H = hidden_states.shape
    x = hidden_states.reshape(-1, H).astype(jnp.float32)
    f32 = lambda a: a.astype(jnp.float32)
    a1 = x @ f32(params["w1"])
    a2 = x @ f32(params["w2"])
    base = (a1 * jax.nn.silu(a2)) @ f32(params["c_proj"])
    logits = x @ f32(params["wg"])
    E = logits.shape[1]
    probs = jax.nn.softmax(logits, axis=-1)
    tv, ti = jax.lax.top_k(probs, top_k)
    nv = tv / jnp.sum(tv, axis=-1, keepdims=True)
    oh = jax.nn.one_hot(ti, E, dtype=jnp.float32)
    gates = jnp.einsum("tk,tke->te", nv, oh)
    moe = jnp.zeros_like(base)
    for e in range(E):
        h1 = (x @ f32(params["lora_w1_A"][e])) @ f32(params["lora_w1_B"][e]) * scaling
        h2 = (x @ f32(params["lora_w2_A"][e])) @ f32(params["lora_w2_B"][e]) * scaling
        inter = h1 * jax.nn.silu(h2)
        lo = (inter @ f32(params["lora_c_A"][e])) @ f32(params["lora_c_B"][e]) * scaling
        moe = moe + gates[:, e:e + 1] * lo
    return (base + moe).reshape(B, S, H)


# ----------------------------------------------------------------------------
# Deterministic parameter construction + test
# ----------------------------------------------------------------------------
def make_params(key, hidden, ffn_half, rank, num_experts):
    ks = jax.random.split(key, 10)

    def w(k, shape, dtype=jnp.bfloat16, scale=0.05):
        return (scale * jax.random.normal(k, shape)).astype(dtype)

    return {
        # base QWenMLP (frozen pretrained weights), stored as [in, out], bf16
        "w1": w(ks[0], (hidden, ffn_half)),
        "w2": w(ks[1], (hidden, ffn_half)),
        "c_proj": w(ks[2], (ffn_half, hidden)),
        # router kept in f32 (tiny GEMM, precision matters for routing)
        "wg": w(ks[3], (hidden, num_experts), dtype=jnp.float32),
        # LoRA experts (PyTorch zero-inits the B matrices; random here so the
        # MoE path is numerically non-trivial in this synthetic test)
        "lora_w1_A": w(ks[4], (num_experts, hidden, rank)),
        "lora_w1_B": w(ks[5], (num_experts, rank, ffn_half)),
        "lora_w2_A": w(ks[6], (num_experts, hidden, rank)),
        "lora_w2_B": w(ks[7], (num_experts, rank, ffn_half)),
        "lora_c_A": w(ks[8], (num_experts, ffn_half, rank)),
        "lora_c_B": w(ks[9], (num_experts, rank, hidden)),
    }


if __name__ == "__main__":
    # small shapes: batch=2, seq=8, hidden=32, intermediate//2=64, rank=8, E=4, k=2
    B, S, H = 2, 8, 32
    FFN_HALF = 64
    RANK = 8
    NUM_EXPERTS = 4
    TOP_K = 2
    LORA_ALPHA = 16
    SCALING = LORA_ALPHA / RANK

    key = jax.random.PRNGKey(0)
    kx, kp = jax.random.split(key)
    hidden_states = jax.random.normal(kx, (B, S, H), dtype=jnp.bfloat16)
    params = make_params(kp, H, FFN_HALF, RANK, NUM_EXPERTS)

    fwd = jax.jit(functools.partial(
        moe_lora_qwen_mlp_forward, top_k=TOP_K, scaling=SCALING))
    combined, aux_loss, exp_counts, gating_logits = fwd(hidden_states, params)
    jax.block_until_ready((combined, aux_loss, exp_counts, gating_logits))

    assert combined.shape == (B, S, H)
    assert gating_logits.shape == (B, S, NUM_EXPERTS)
    assert exp_counts.shape == (NUM_EXPERTS,)
    assert bool(jnp.all(jnp.isfinite(combined.astype(jnp.float32))))

    # bf16-tolerance correctness check against a pure-JAX f32 reference
    ref = reference_forward(hidden_states, params, top_k=TOP_K, scaling=SCALING)
    max_err = float(jnp.max(jnp.abs(combined.astype(jnp.float32) - ref)))
    assert max_err < 2e-2, f"max abs error too large: {max_err}"

    print("KERNEL_OK")
</pallas_src>

<mosaic_0001>
module attributes {stable_mosaic.version = 11 : i64} {
  func.func @_moe_lora_kernel(%arg0: i32, %arg1: memref<16x32xbf16, #tpu.memory_space<vmem>>, %arg2: memref<16x32xbf16, #tpu.memory_space<vmem>>, %arg3: memref<16x128xf32, #tpu.memory_space<vmem>>, %arg4: memref<32x32xbf16, #tpu.memory_space<vmem>>, %arg5: memref<32x64xbf16, #tpu.memory_space<vmem>>, %arg6: memref<32x32xbf16, #tpu.memory_space<vmem>>, %arg7: memref<32x64xbf16, #tpu.memory_space<vmem>>, %arg8: memref<64x32xbf16, #tpu.memory_space<vmem>>, %arg9: memref<32x32xbf16, #tpu.memory_space<vmem>>, %arg10: memref<16x32xbf16, #tpu.memory_space<vmem>>) attributes {dimension_semantics = [#tpu.dimension_semantics<parallel>], iteration_bounds = array<i64: 1>, scalar_prefetch = 0 : i64, scratch_operands = 0 : i64, tpu.core_type = #tpu.core_type<tc>, window_params = [{transform_indices = @transform_0, window_bounds = array<i64: 16, 32>}, {transform_indices = @transform_1, window_bounds = array<i64: 16, 32>}, {transform_indices = @transform_2, window_bounds = array<i64: 16, 128>}, {pipeline_mode = #tpu.pipeline_mode<synchronous>, transform_indices = @transform_3, window_bounds = array<i64: 32, 32>}, {pipeline_mode = #tpu.pipeline_mode<synchronous>, transform_indices = @transform_4, window_bounds = array<i64: 32, 64>}, {pipeline_mode = #tpu.pipeline_mode<synchronous>, transform_indices = @transform_5, window_bounds = array<i64: 32, 32>}, {pipeline_mode = #tpu.pipeline_mode<synchronous>, transform_indices = @transform_6, window_bounds = array<i64: 32, 64>}, {pipeline_mode = #tpu.pipeline_mode<synchronous>, transform_indices = @transform_7, window_bounds = array<i64: 64, 32>}, {pipeline_mode = #tpu.pipeline_mode<synchronous>, transform_indices = @transform_8, window_bounds = array<i64: 32, 32>}, {transform_indices = @transform_9, window_bounds = array<i64: 16, 32>}]} {
    %c0 = arith.constant 0 : index
    %c0_0 = arith.constant 0 : index
    %0 = vector.load %arg1[%c0, %c0_0] : memref<16x32xbf16, #tpu.memory_space<vmem>>, vector<16x32xbf16>
    %c0_1 = arith.constant 0 : index
    %c0_2 = arith.constant 0 : index
    %1 = vector.load %arg4[%c0_1, %c0_2] : memref<32x32xbf16, #tpu.memory_space<vmem>>, vector<32x32xbf16>
    %cst = arith.constant dense<0.000000e+00> : vector<16x32xf32>
    %2 = tpu.matmul %0, %1, %cst {dimension_numbers = #tpu.dot_dimension_numbers<[1], [0], [0], [1], [0, 0, 1, 1], [], []>} : vector<16x32xbf16>, vector<32x32xbf16>, vector<16x32xf32> -> vector<16x32xf32>
    %c0_3 = arith.constant 0 : index
    %c0_4 = arith.constant 0 : index
    %3 = vector.load %arg6[%c0_3, %c0_4] : memref<32x32xbf16, #tpu.memory_space<vmem>>, vector<32x32xbf16>
    %cst_5 = arith.constant dense<0.000000e+00> : vector<16x32xf32>
    %4 = tpu.matmul %0, %3, %cst_5 {dimension_numbers = #tpu.dot_dimension_numbers<[1], [0], [0], [1], [0, 0, 1, 1], [], []>} : vector<16x32xbf16>, vector<32x32xbf16>, vector<16x32xf32> -> vector<16x32xf32>
    %c0_6 = arith.constant 0 : index
    %c0_7 = arith.constant 0 : index
    %5 = vector.load %arg5[%c0_6, %c0_7] : memref<32x64xbf16, #tpu.memory_space<vmem>>, vector<32x64xbf16>
    %c0_8 = arith.constant 0 : index
    %c0_9 = arith.constant 0 : index
    %6 = vector.load %arg7[%c0_8, %c0_9] : memref<32x64xbf16, #tpu.memory_space<vmem>>, vector<32x64xbf16>
    %c0_10 = arith.constant 0 : index
    %c0_11 = arith.constant 0 : index
    %7 = vector.load %arg8[%c0_10, %c0_11] : memref<64x32xbf16, #tpu.memory_space<vmem>>, vector<64x32xbf16>
    %c0_12 = arith.constant 0 : index
    %c0_13 = arith.constant 0 : index
    %8 = vector.load %arg9[%c0_12, %c0_13] : memref<32x32xbf16, #tpu.memory_space<vmem>>, vector<32x32xbf16>
    %c0_14 = arith.constant 0 : index
    %c0_15 = arith.constant 0 : index
    %9 = vector.load %arg3[%c0_14, %c0_15] : memref<16x128xf32, #tpu.memory_space<vmem>>, vector<16x128xf32>
    %c0_16 = arith.constant 0 : index
    %c0_17 = arith.constant 0 : index
    %10 = vector.load %arg2[%c0_16, %c0_17] : memref<16x32xbf16, #tpu.memory_space<vmem>>, vector<16x32xbf16>
    %11 = arith.extf %10 : vector<16x32xbf16> to vector<16x32xf32>
    %12 = vector.extract_strided_slice %2 {offsets = [0, 0], sizes = [16, 8], strides = [1, 1]} : vector<16x32xf32> to vector<16x8xf32>
    %13 = arith.truncf %12 : vector<16x8xf32> to vector<16x8xbf16>
    %14 = vector.extract_strided_slice %5 {offsets = [0, 0], sizes = [8, 64], strides = [1, 1]} : vector<32x64xbf16> to vector<8x64xbf16>
    %cst_18 = arith.constant dense<0.000000e+00> : vector<16x64xf32>
    %15 = tpu.matmul %13, %14, %cst_18 {dimension_numbers = #tpu.dot_dimension_numbers<[1], [0], [0], [1], [0, 0, 1, 1], [], []>} : vector<16x8xbf16>, vector<8x64xbf16>, vector<16x64xf32> -> vector<16x64xf32>
    %cst_19 = arith.constant 2.000000e+00 : f32
    %16 = vector.broadcast %cst_19 : f32 to vector<16x64xf32>
    %17 = arith.mulf %15, %16 : vector<16x64xf32>
    %18 = vector.extract_strided_slice %4 {offsets = [0, 0], sizes = [16, 8], strides = [1, 1]} : vector<16x32xf32> to vector<16x8xf32>
    %19 = arith.truncf %18 : vector<16x8xf32> to vector<16x8xbf16>
    %20 = vector.extract_strided_slice %6 {offsets = [0, 0], sizes = [8, 64], strides = [1, 1]} : vector<32x64xbf16> to vector<8x64xbf16>
    %cst_20 = arith.constant dense<0.000000e+00> : vector<16x64xf32>
    %21 = tpu.matmul %19, %20, %cst_20 {dimension_numbers = #tpu.dot_dimension_numbers<[1], [0], [0], [1], [0, 0, 1, 1], [], []>} : vector<16x8xbf16>, vector<8x64xbf16>, vector<16x64xf32> -> vector<16x64xf32>
    %cst_21 = arith.constant 2.000000e+00 : f32
    %22 = vector.broadcast %cst_21 : f32 to vector<16x64xf32>
    %23 = arith.mulf %21, %22 : vector<16x64xf32>
    %24 = arith.negf %23 : vector<16x64xf32>
    %25 = math.exp %24 : vector<16x64xf32>
    %cst_22 = arith.constant 1.000000e+00 : f32
    %26 = vector.broadcast %cst_22 : f32 to vector<16x64xf32>
    %27 = arith.addf %26, %25 : vector<16x64xf32>
    %28 = arith.divf %26, %27 : vector<16x64xf32>
    %29 = arith.mulf %23, %28 : vector<16x64xf32>
    %30 = arith.mulf %17, %29 : vector<16x64xf32>
    %31 = arith.truncf %30 : vector<16x64xf32> to vector<16x64xbf16>
    %32 = vector.extract_strided_slice %7 {offsets = [0, 0], sizes = [64, 8], strides = [1, 1]} : vector<64x32xbf16> to vector<64x8xbf16>
    %cst_23 = arith.constant dense<0.000000e+00> : vector<16x8xf32>
    %33 = tpu.matmul %31, %32, %cst_23 {dimension_numbers = #tpu.dot_dimension_numbers<[1], [0], [0], [1], [0, 0, 1, 1], [], []>} : vector<16x64xbf16>, vector<64x8xbf16>, vector<16x8xf32> -> vector<16x8xf32>
    %34 = vector.extract_strided_slice %9 {offsets = [0, 0], sizes = [16, 1], strides = [1, 1]} : vector<16x128xf32> to vector<16x1xf32>
    %cst_24 = arith.constant 2.000000e+00 : f32
    %35 = vector.broadcast %cst_24 : f32 to vector<16x1xf32>
    %36 = arith.mulf %34, %35 : vector<16x1xf32>
    %37 = vector.broadcast %36 : vector<16x1xf32> to vector<16x8xf32>
    %38 = arith.mulf %33, %37 : vector<16x8xf32>
    %39 = arith.truncf %38 : vector<16x8xf32> to vector<16x8xbf16>
    %40 = vector.extract_strided_slice %8 {offsets = [0, 0], sizes = [8, 32], strides = [1, 1]} : vector<32x32xbf16> to vector<8x32xbf16>
    %cst_25 = arith.constant dense<0.000000e+00> : vector<16x32xf32>
    %41 = tpu.matmul %39, %40, %cst_25 {dimension_numbers = #tpu.dot_dimension_numbers<[1], [0], [0], [1], [0, 0, 1, 1], [], []>} : vector<16x8xbf16>, vector<8x32xbf16>, vector<16x32xf32> -> vector<16x32xf32>
    %42 = arith.addf %11, %41 : vector<16x32xf32>
    %43 = vector.extract_strided_slice %2 {offsets = [0, 8], sizes = [16, 8], strides = [1, 1]} : vector<16x32xf32> to vector<16x8xf32>
    %44 = arith.truncf %43 : vector<16x8xf32> to vector<16x8xbf16>
    %45 = vector.extract_strided_slice %5 {offsets = [8, 0], sizes = [8, 64], strides = [1, 1]} : vector<32x64xbf16> to vector<8x64xbf16>
    %cst_26 = arith.constant dense<0.000000e+00> : vector<16x64xf32>
    %46 = tpu.matmul %44, %45, %cst_26 {dimension_numbers = #tpu.dot_dimension_numbers<[1], [0], [0], [1], [0, 0, 1, 1], [], []>} : vector<16x8xbf16>, vector<8x64xbf16>, vector<16x64xf32> -> vector<16x64xf32>
    %cst_27 = arith.constant 2.000000e+00 : f32
    %47 = vector.broadcast %cst_27 : f32 to vector<16x64xf32>
    %48 = arith.mulf %46, %47 : vector<16x64xf32>
    %49 = vector.extract_strided_slice %4 {offsets = [0, 8], sizes = [16, 8], strides = [1, 1]} : vector<16x32xf32> to vector<16x8xf32>
    %50 = arith.truncf %49 : vector<16x8xf32> to vector<16x8xbf16>
    %51 = vector.extract_strided_slice %6 {offsets = [8, 0], sizes = [8, 64], strides = [1, 1]} : vector<32x64xbf16> to vector<8x64xbf16>
    %cst_28 = arith.constant dense<0.000000e+00> : vector<16x64xf32>
    %52 = tpu.matmul %50, %51, %cst_28 {dimension_numbers = #tpu.dot_dimension_numbers<[1], [0], [0], [1], [0, 0, 1, 1], [], []>} : vector<16x8xbf16>, vector<8x64xbf16>, vector<16x64xf32> -> vector<16x64xf32>
    %cst_29 = arith.constant 2.000000e+00 : f32
    %53 = vector.broadcast %cst_29 : f32 to vector<16x64xf32>
    %54 = arith.mulf %52, %53 : vector<16x64xf32>
    %55 = arith.negf %54 : vector<16x64xf32>
    %56 = math.exp %55 : vector<16x64xf32>
    %cst_30 = arith.constant 1.000000e+00 : f32
    %57 = vector.broadcast %cst_30 : f32 to vector<16x64xf32>
    %58 = arith.addf %57, %56 : vector<16x64xf32>
    %59 = arith.divf %57, %58 : vector<16x64xf32>
    %60 = arith.mulf %54, %59 : vector<16x64xf32>
    %61 = arith.mulf %48, %60 : vector<16x64xf32>
    %62 = arith.truncf %61 : vector<16x64xf32> to vector<16x64xbf16>
    %63 = vector.extract_strided_slice %7 {offsets = [0, 8], sizes = [64, 8], strides = [1, 1]} : vector<64x32xbf16> to vector<64x8xbf16>
    %cst_31 = arith.constant dense<0.000000e+00> : vector<16x8xf32>
    %64 = tpu.matmul %62, %63, %cst_31 {dimension_numbers = #tpu.dot_dimension_numbers<[1], [0], [0], [1], [0, 0, 1, 1], [], []>} : vector<16x64xbf16>, vector<64x8xbf16>, vector<16x8xf32> -> vector<16x8xf32>
    %65 = vector.extract_strided_slice %9 {offsets = [0, 1], sizes = [16, 1], strides = [1, 1]} : vector<16x128xf32> to vector<16x1xf32>
    %cst_32 = arith.constant 2.000000e+00 : f32
    %66 = vector.broadcast %cst_32 : f32 to vector<16x1xf32>
    %67 = arith.mulf %65, %66 : vector<16x1xf32>
    %68 = vector.broadcast %67 : vector<16x1xf32> to vector<16x8xf32>
    %69 = arith.mulf %64, %68 : vector<16x8xf32>
    %70 = arith.truncf %69 : vector<16x8xf32> to vector<16x8xbf16>
    %71 = vector.extract_strided_slice %8 {offsets = [8, 0], sizes = [8, 32], strides = [1, 1]} : vector<32x32xbf16> to vector<8x32xbf16>
    %cst_33 = arith.constant dense<0.000000e+00> : vector<16x32xf32>
    %72 = tpu.matmul %70, %71, %cst_33 {dimension_numbers = #tpu.dot_dimension_numbers<[1], [0], [0], [1], [0, 0, 1, 1], [], []>} : vector<16x8xbf16>, vector<8x32xbf16>, vector<16x32xf32> -> vector<16x32xf32>
    %73 = arith.addf %42, %72 : vector<16x32xf32>
    %74 = vector.extract_strided_slice %2 {offsets = [0, 16], sizes = [16, 8], strides = [1, 1]} : vector<16x32xf32> to vector<16x8xf32>
    %75 = arith.truncf %74 : vector<16x8xf32> to vector<16x8xbf16>
    %76 = vector.extract_strided_slice %5 {offsets = [16, 0], sizes = [8, 64], strides = [1, 1]} : vector<32x64xbf16> to vector<8x64xbf16>
    %cst_34 = arith.constant dense<0.000000e+00> : vector<16x64xf32>
    %77 = tpu.matmul %75, %76, %cst_34 {dimension_numbers = #tpu.dot_dimension_numbers<[1], [0], [0], [1], [0, 0, 1, 1], [], []>} : vector<16x8xbf16>, vector<8x64xbf16>, vector<16x64xf32> -> vector<16x64xf32>
    %cst_35 = arith.constant 2.000000e+00 : f32
    %78 = vector.broadcast %cst_35 : f32 to vector<16x64xf32>
    %79 = arith.mulf %77, %78 : vector<16x64xf32>
    %80 = vector.extract_strided_slice %4 {offsets = [0, 16], sizes = [16, 8], strides = [1, 1]} : vector<16x32xf32> to vector<16x8xf32>
    %81 = arith.truncf %80 : vector<16x8xf32> to vector<16x8xbf16>
    %82 = vector.extract_strided_slice %6 {offsets = [16, 0], sizes = [8, 64], strides = [1, 1]} : vector<32x64xbf16> to vector<8x64xbf16>
    %cst_36 = arith.constant dense<0.000000e+00> : vector<16x64xf32>
    %83 = tpu.matmul %81, %82, %cst_36 {dimension_numbers = #tpu.dot_dimension_numbers<[1], [0], [0], [1], [0, 0, 1, 1], [], []>} : vector<16x8xbf16>, vector<8x64xbf16>, vector<16x64xf32> -> vector<16x64xf32>
    %cst_37 = arith.constant 2.000000e+00 : f32
    %84 = vector.broadcast %cst_37 : f32 to vector<16x64xf32>
    %85 = arith.mulf %83, %84 : vector<16x64xf32>
    %86 = arith.negf %85 : vector<16x64xf32>
    %87 = math.exp %86 : vector<16x64xf32>
    %cst_38 = arith.constant 1.000000e+00 : f32
    %88 = vector.broadcast %cst_38 : f32 to vector<16x64xf32>
    %89 = arith.addf %88, %87 : vector<16x64xf32>
    %90 = arith.divf %88, %89 : vector<16x64xf32>
    %91 = arith.mulf %85, %90 : vector<16x64xf32>
    %92 = arith.mulf %79, %91 : vector<16x64xf32>
    %93 = arith.truncf %92 : vector<16x64xf32> to vector<16x64xbf16>
    %94 = vector.extract_strided_slice %7 {offsets = [0, 16], sizes = [64, 8], strides = [1, 1]} : vector<64x32xbf16> to vector<64x8xbf16>
    %cst_39 = arith.constant dense<0.000000e+00> : vector<16x8xf32>
    %95 = tpu.matmul %93, %94, %cst_39 {dimension_numbers = #tpu.dot_dimension_numbers<[1], [0], [0], [1], [0, 0, 1, 1], [], []>} : vector<16x64xbf16>, vector<64x8xbf16>, vector<16x8xf32> -> vector<16x8xf32>
    %96 = vector.extract_strided_slice %9 {offsets = [0, 2], sizes = [16, 1], strides = [1, 1]} : vector<16x128xf32> to vector<16x1xf32>
    %cst_40 = arith.constant 2.000000e+00 : f32
    %97 = vector.broadcast %cst_40 : f32 to vector<16x1xf32>
    %98 = arith.mulf %96, %97 : vector<16x1xf32>
    %99 = vector.broadcast %98 : vector<16x1xf32> to vector<16x8xf32>
    %100 = arith.mulf %95, %99 : vector<16x8xf32>
    %101 = arith.truncf %100 : vector<16x8xf32> to vector<16x8xbf16>
    %102 = vector.extract_strided_slice %8 {offsets = [16, 0], sizes = [8, 32], strides = [1, 1]} : vector<32x32xbf16> to vector<8x32xbf16>
    %cst_41 = arith.constant dense<0.000000e+00> : vector<16x32xf32>
    %103 = tpu.matmul %101, %102, %cst_41 {dimension_numbers = #tpu.dot_dimension_numbers<[1], [0], [0], [1], [0, 0, 1, 1], [], []>} : vector<16x8xbf16>, vector<8x32xbf16>, vector<16x32xf32> -> vector<16x32xf32>
    %104 = arith.addf %73, %103 : vector<16x32xf32>
    %105 = vector.extract_strided_slice %2 {offsets = [0, 24], sizes = [16, 8], strides = [1, 1]} : vector<16x32xf32> to vector<16x8xf32>
    %106 = arith.truncf %105 : vector<16x8xf32> to vector<16x8xbf16>
    %107 = vector.extract_strided_slice %5 {offsets = [24, 0], sizes = [8, 64], strides = [1, 1]} : vector<32x64xbf16> to vector<8x64xbf16>
    %cst_42 = arith.constant dense<0.000000e+00> : vector<16x64xf32>
    %108 = tpu.matmul %106, %107, %cst_42 {dimension_numbers = #tpu.dot_dimension_numbers<[1], [0], [0], [1], [0, 0, 1, 1], [], []>} : vector<16x8xbf16>, vector<8x64xbf16>, vector<16x64xf32> -> vector<16x64xf32>
    %cst_43 = arith.constant 2.000000e+00 : f32
    %109 = vector.broadcast %cst_43 : f32 to vector<16x64xf32>
    %110 = arith.mulf %108, %109 : vector<16x64xf32>
    %111 = vector.extract_strided_slice %4 {offsets = [0, 24], sizes = [16, 8], strides = [1, 1]} : vector<16x32xf32> to vector<16x8xf32>
    %112 = arith.truncf %111 : vector<16x8xf32> to vector<16x8xbf16>
    %113 = vector.extract_strided_slice %6 {offsets = [24, 0], sizes = [8, 64], strides = [1, 1]} : vector<32x64xbf16> to vector<8x64xbf16>
    %cst_44 = arith.constant dense<0.000000e+00> : vector<16x64xf32>
    %114 = tpu.matmul %112, %113, %cst_44 {dimension_numbers = #tpu.dot_dimension_numbers<[1], [0], [0], [1], [0, 0, 1, 1], [], []>} : vector<16x8xbf16>, vector<8x64xbf16>, vector<16x64xf32> -> vector<16x64xf32>
    %cst_45 = arith.constant 2.000000e+00 : f32
    %115 = vector.broadcast %cst_45 : f32 to vector<16x64xf32>
    %116 = arith.mulf %114, %115 : vector<16x64xf32>
    %117 = arith.negf %116 : vector<16x64xf32>
    %118 = math.exp %117 : vector<16x64xf32>
    %cst_46 = arith.constant 1.000000e+00 : f32
    %119 = vector.broadcast %cst_46 : f32 to vector<16x64xf32>
    %120 = arith.addf %119, %118 : vector<16x64xf32>
    %121 = arith.divf %119, %120 : vector<16x64xf32>
    %122 = arith.mulf %116, %121 : vector<16x64xf32>
    %123 = arith.mulf %110, %122 : vector<16x64xf32>
    %124 = arith.truncf %123 : vector<16x64xf32> to vector<16x64xbf16>
    %125 = vector.extract_strided_slice %7 {offsets = [0, 24], sizes = [64, 8], strides = [1, 1]} : vector<64x32xbf16> to vector<64x8xbf16>
    %cst_47 = arith.constant dense<0.000000e+00> : vector<16x8xf32>
    %126 = tpu.matmul %124, %125, %cst_47 {dimension_numbers = #tpu.dot_dimension_numbers<[1], [0], [0], [1], [0, 0, 1, 1], [], []>} : vector<16x64xbf16>, vector<64x8xbf16>, vector<16x8xf32> -> vector<16x8xf32>
    %127 = vector.extract_strided_slice %9 {offsets = [0, 3], sizes = [16, 1], strides = [1, 1]} : vector<16x128xf32> to vector<16x1xf32>
    %cst_48 = arith.constant 2.000000e+00 : f32
    %128 = vector.broadcast %cst_48 : f32 to vector<16x1xf32>
    %129 = arith.mulf %127, %128 : vector<16x1xf32>
    %130 = vector.broadcast %129 : vector<16x1xf32> to vector<16x8xf32>
    %131 = arith.mulf %126, %130 : vector<16x8xf32>
    %132 = arith.truncf %131 : vector<16x8xf32> to vector<16x8xbf16>
    %133 = vector.extract_strided_slice %8 {offsets = [24, 0], sizes = [8, 32], strides = [1, 1]} : vector<32x32xbf16> to vector<8x32xbf16>
    %cst_49 = arith.constant dense<0.000000e+00> : vector<16x32xf32>
    %134 = tpu.matmul %132, %133, %cst_49 {dimension_numbers = #tpu.dot_dimension_numbers<[1], [0], [0], [1], [0, 0, 1, 1], [], []>} : vector<16x8xbf16>, vector<8x32xbf16>, vector<16x32xf32> -> vector<16x32xf32>
    %135 = arith.addf %104, %134 : vector<16x32xf32>
    %136 = arith.truncf %135 : vector<16x32xf32> to vector<16x32xbf16>
    %c0_50 = arith.constant 0 : index
    %c0_51 = arith.constant 0 : index
    %137 = vector.load %arg10[%c0_50, %c0_51] : memref<16x32xbf16, #tpu.memory_space<vmem>>, vector<16x32xbf16>
    tpu.vector_store %arg10[%c0_50, %c0_51], %136 {strides = array<i32>} : memref<16x32xbf16, #tpu.memory_space<vmem>>, vector<16x32xbf16>,
    return
  }
  func.func @transform_0(%arg0: i32) -> (i32, i32) {
    %c0_i32 = arith.constant 0 : i32
    %c0_i32_0 = arith.constant 0 : i32
    return %arg0, %c0_i32 : i32, i32
  }
  func.func @transform_1(%arg0: i32) -> (i32, i32) {
    %c0_i32 = arith.constant 0 : i32
    %c0_i32_0 = arith.constant 0 : i32
    return %arg0, %c0_i32 : i32, i32
  }
  func.func @transform_2(%arg0: i32) -> (i32, i32) {
    %c0_i32 = arith.constant 0 : i32
    %c0_i32_0 = arith.constant 0 : i32
    return %arg0, %c0_i32 : i32, i32
  }
  func.func @transform_3(%arg0: i32) -> (i32, i32) {
    %c0_i32 = arith.constant 0 : i32
    %c0_i32_0 = arith.constant 0 : i32
    %c0_i32_1 = arith.constant 0 : i32
    return %c0_i32, %c0_i32_0 : i32, i32
  }
  func.func @transform_4(%arg0: i32) -> (i32, i32) {
    %c0_i32 = arith.constant 0 : i32
    %c0_i32_0 = arith.constant 0 : i32
    %c0_i32_1 = arith.constant 0 : i32
    return %c0_i32, %c0_i32_0 : i32, i32
  }
  func.func @transform_5(%arg0: i32) -> (i32, i32) {
    %c0_i32 = arith.constant 0 : i32
    %c0_i32_0 = arith.constant 0 : i32
    %c0_i32_1 = arith.constant 0 : i32
    return %c0_i32, %c0_i32_0 : i32, i32
  }
  func.func @transform_6(%arg0: i32) -> (i32, i32) {
    %c0_i32 = arith.constant 0 : i32
    %c0_i32_0 = arith.constant 0 : i32
    %c0_i32_1 = arith.constant 0 : i32
    return %c0_i32, %c0_i32_0 : i32, i32
  }
  func.func @transform_7(%arg0: i32) -> (i32, i32) {
    %c0_i32 = arith.constant 0 : i32
    %c0_i32_0 = arith.constant 0 : i32
    %c0_i32_1 = arith.constant 0 : i32
    return %c0_i32, %c0_i32_0 : i32, i32
  }
  func.func @transform_8(%arg0: i32) -> (i32, i32) {
    %c0_i32 = arith.constant 0 : i32
    %c0_i32_0 = arith.constant 0 : i32
    %c0_i32_1 = arith.constant 0 : i32
    return %c0_i32, %c0_i32_0 : i32, i32
  }
  func.func @transform_9(%arg0: i32) -> (i32, i32) {
    %c0_i32 = arith.constant 0 : i32
    %c0_i32_0 = arith.constant 0 : i32
    return %arg0, %c0_i32 : i32, i32
  }
}

module attributes {stable_mosaic.version = 11 : i64} {
  func.func @_base_mlp_kernel(%arg0: i32, %arg1: i32, %arg2: memref<16x32xbf16, #tpu.memory_space<vmem>>, %arg3: memref<32x64xbf16, #tpu.memory_space<vmem>>, %arg4: memref<32x64xbf16, #tpu.memory_space<vmem>>, %arg5: memref<64x32xbf16, #tpu.memory_space<vmem>>, %arg6: memref<16x32xbf16, #tpu.memory_space<vmem>>, %arg7: memref<16x32xf32, #tpu.memory_space<vmem>>) attributes {dimension_semantics = [#tpu.dimension_semantics<parallel>, #tpu.dimension_semantics<arbitrary>], iteration_bounds = array<i64: 1, 1>, scalar_prefetch = 0 : i64, scratch_operands = 1 : i64, tpu.core_type = #tpu.core_type<tc>, window_params = [{transform_indices = @transform_0, window_bounds = array<i64: 16, 32>}, {transform_indices = @transform_1, window_bounds = array<i64: 32, 64>}, {transform_indices = @transform_2, window_bounds = array<i64: 32, 64>}, {transform_indices = @transform_3, window_bounds = array<i64: 64, 32>}, {transform_indices = @transform_4, window_bounds = array<i64: 16, 32>}]} {
    %c0_i32 = arith.constant 0 : i32
    %0 = arith.cmpi eq, %arg1, %c0_i32 : i32
    %1 = arith.extui %0 : i1 to i32
    %c0_i32_0 = arith.constant 0 : i32
    %2 = arith.cmpi ne, %1, %c0_i32_0 : i32
    scf.if %2 {
      %cst_17 = arith.constant 0.000000e+00 : f32
      %24 = vector.broadcast %cst_17 : f32 to vector<16x32xf32>
      %c0_18 = arith.constant 0 : index
      %c0_19 = arith.constant 0 : index
      %25 = vector.load %arg7[%c0_18, %c0_19] : memref<16x32xf32, #tpu.memory_space<vmem>>, vector<16x32xf32>
      tpu.vector_store %arg7[%c0_18, %c0_19], %24 {strides = array<i32>} : memref<16x32xf32, #tpu.memory_space<vmem>>, vector<16x32xf32>,
    } else {
    }
    %c0 = arith.constant 0 : index
    %c0_1 = arith.constant 0 : index
    %3 = vector.load %arg2[%c0, %c0_1] : memref<16x32xbf16, #tpu.memory_space<vmem>>, vector<16x32xbf16>
    %c0_2 = arith.constant 0 : index
    %c0_3 = arith.constant 0 : index
    %4 = vector.load %arg3[%c0_2, %c0_3] : memref<32x64xbf16, #tpu.memory_space<vmem>>, vector<32x64xbf16>
    %cst = arith.constant dense<0.000000e+00> : vector<16x64xf32>
    %5 = tpu.matmul %3, %4, %cst {dimension_numbers = #tpu.dot_dimension_numbers<[1], [0], [0], [1], [0, 0, 1, 1], [], []>} : vector<16x32xbf16>, vector<32x64xbf16>, vector<16x64xf32> -> vector<16x64xf32>
    %c0_4 = arith.constant 0 : index
    %c0_5 = arith.constant 0 : index
    %6 = vector.load %arg4[%c0_4, %c0_5] : memref<32x64xbf16, #tpu.memory_space<vmem>>, vector<32x64xbf16>
    %cst_6 = arith.constant dense<0.000000e+00> : vector<16x64xf32>
    %7 = tpu.matmul %3, %6, %cst_6 {dimension_numbers = #tpu.dot_dimension_numbers<[1], [0], [0], [1], [0, 0, 1, 1], [], []>} : vector<16x32xbf16>, vector<32x64xbf16>, vector<16x64xf32> -> vector<16x64xf32>
    %8 = arith.negf %7 : vector<16x64xf32>
    %9 = math.exp %8 : vector<16x64xf32>
    %cst_7 = arith.constant 1.000000e+00 : f32
    %10 = vector.broadcast %cst_7 : f32 to vector<16x64xf32>
    %11 = arith.addf %10, %9 : vector<16x64xf32>
    %12 = arith.divf %10, %11 : vector<16x64xf32>
    %13 = arith.mulf %7, %12 : vector<16x64xf32>
    %14 = arith.mulf %5, %13 : vector<16x64xf32>
    %15 = arith.truncf %14 : vector<16x64xf32> to vector<16x64xbf16>
    %c0_8 = arith.constant 0 : index
    %c0_9 = arith.constant 0 : index
    %16 = vector.load %arg7[%c0_8, %c0_9] : memref<16x32xf32, #tpu.memory_space<vmem>>, vector<16x32xf32>
    %c0_10 = arith.constant 0 : index
    %c0_11 = arith.constant 0 : index
    %17 = vector.load %arg5[%c0_10, %c0_11] : memref<64x32xbf16, #tpu.memory_space<vmem>>, vector<64x32xbf16>
    %cst_12 = arith.constant dense<0.000000e+00> : vector<16x32xf32>
    %18 = tpu.matmul %15, %17, %cst_12 {dimension_numbers = #tpu.dot_dimension_numbers<[1], [0], [0], [1], [0, 0, 1, 1], [], []>} : vector<16x64xbf16>, vector<64x32xbf16>, vector<16x32xf32> -> vector<16x32xf32>
    %19 = arith.addf %16, %18 : vector<16x32xf32>
    %c0_13 = arith.constant 0 : index
    %c0_14 = arith.constant 0 : index
    %20 = vector.load %arg7[%c0_13, %c0_14] : memref<16x32xf32, #tpu.memory_space<vmem>>, vector<16x32xf32>
    tpu.vector_store %arg7[%c0_13, %c0_14], %19 {strides = array<i32>} : memref<16x32xf32, #tpu.memory_space<vmem>>, vector<16x32xf32>,
    %c0_i32_15 = arith.constant 0 : i32
    %21 = arith.cmpi eq, %arg1, %c0_i32_15 : i32
    %22 = arith.extui %21 : i1 to i32
    %c0_i32_16 = arith.constant 0 : i32
    %23 = arith.cmpi ne, %22, %c0_i32_16 : i32
    scf.if %23 {
      %c0_17 = arith.constant 0 : index
      %c0_18 = arith.constant 0 : index
      %24 = vector.load %arg7[%c0_17, %c0_18] : memref<16x32xf32, #tpu.memory_space<vmem>>, vector<16x32xf32>
      %25 = arith.truncf %24 : vector<16x32xf32> to vector<16x32xbf16>
      %c0_19 = arith.constant 0 : index
      %c0_20 = arith.constant 0 : index
      %26 = vector.load %arg6[%c0_19, %c0_20] : memref<16x32xbf16, #tpu.memory_space<vmem>>, vector<16x32xbf16>
      tpu.vector_store %arg6[%c0_19, %c0_20], %25 {strides = array<i32>} : memref<16x32xbf16, #tpu.memory_space<vmem>>, vector<16x32xbf16>,
    } else {
    }
    return
  }
  func.func @transform_0(%arg0: i32, %arg1: i32) -> (i32, i32) {
    %c0_i32 = arith.constant 0 : i32
    %c0_i32_0 = arith.constant 0 : i32
    return %arg0, %c0_i32 : i32, i32
  }
  func.func @transform_1(%arg0: i32, %arg1: i32) -> (i32, i32) {
    %c0_i32 = arith.constant 0 : i32
    %c0_i32_0 = arith.constant 0 : i32
    return %c0_i32, %arg1 : i32, i32
  }
  func.func @transform_2(%arg0: i32, %arg1: i32) -> (i32, i32) {
    %c0_i32 = arith.constant 0 : i32
    %c0_i32_0 = arith.constant 0 : i32
    return %c0_i32, %arg1 : i32, i32
  }
  func.func @transform_3(%arg0: i32, %arg1: i32) -> (i32, i32) {
    %c0_i32 = arith.constant 0 : i32
    %c0_i32_0 = arith.constant 0 : i32
    return %arg1, %c0_i32 : i32, i32
  }
  func.func @transform_4(%arg0: i32, %arg1: i32) -> (i32, i32) {
    %c0_i32 = arith.constant 0 : i32
    %c0_i32_0 = arith.constant 0 : i32
    return %arg0, %c0_i32 : i32, i32
  }
}

</mosaic_0001>

<bundles_post_ra>
// kernel: moe_lora_qwen_mlp_forward.2
= control target key start
LH: loop header
LB: loop body
LE: loop exit
PB: predicated region body
PF: predicated region fallthrough
CT: control target
= control target key end

     0   :  { %vm22_vm0 = vcmask 261120   ;;  %v346_v0 = vmov 0.0   ;;  %vm347_vm1 = vmmov 0   ;;  %vm201_vm2 = vcmask 523264   ;;  %s415_s1 = inlined_call_operand.vmem [shape: bf16[32,64], index: 1, kind: input, shape index: {}]   ;;  %s416_s0 = inlined_call_operand.vmem [shape: bf16[16,32], index: 0, kind: input, shape index: {}]   ;;  %s417_s2 = inlined_call_operand.vmem [shape: bf16[32,64], index: 2, kind: input, shape index: {}]   ;;  %s418_s3 = inlined_call_operand.vmem [shape: bf16[64,32], index: 3, kind: input, shape index: {}]   ;;  %s419_s4 = inlined_call_operand.vmem [shape: bf16[16,32], index: 4, kind: output, shape index: {}]  }
   0x1   :  { %299 = vmatprep.subr.bf16.mxu1 %v346_v0  ;;  %v329_v1 = vld [vmem:[%s415_s1 + $0x8] sm:$0xff]   ;;  %303 = vmatprep.mubr.msk.bf16.mxu1 %vm347_vm1, %v346_v0  ;;  %23 = vst.msk [vmem:[#allocation2] sm:$0xff] %vm22_vm0, %v346_v0  ;;  %24 = vst.msk [vmem:[#allocation2 + $0x8] sm:$0xff] %vm22_vm0, %v346_v0  ;;  %v330_v2 = vld [vmem:[%s415_s1] sm:$0xff]   ;;  %vm263_vm3 = vcmask 257024  }
   0x2   :  { %315 = vmatprep.subr.bf16.mxu0 %v346_v0  ;;  %323 = vmatprep.mubr.msk.bf16.mxu0 %vm347_vm1, %v346_v0  ;;  %v331_v3 = vld [vmem:[%s416_s0] sm:$0xff]   ;;  %v332_v4 = vld [vmem:[%s417_s2 + $0x8] sm:$0xff]   ;;  %v334_v6 = vld [vmem:[%s418_s3 + $0x18] sm:$0xff]  }
   0x3   :  { %300 = vmatpush3.bf16.msra.mxu1 %v329_v1  ;;  %v333_v5 = vld [vmem:[%s417_s2] sm:$0xff]   ;;  %316 = vmatpush3.bf16.msra.mxu0 %v334_v6  ;;  %v335_v7 = vld [vmem:[%s418_s3 + $0x10] sm:$0xff]   ;;  %v336_v8 = vld [vmem:[%s418_s3 + $0x8] sm:$0xff]  }
   0x4   :  { %301 = vmatprep.subr.bf16.mxu1 %v346_v0  ;;  %317 = vmatprep.subr.bf16.mxu0 %v346_v0  ;;  %v337_v9 = vld [vmem:[%s418_s3] sm:$0xff]  }
   0x7   :  { %302 = vmatpush3.bf16.msra.mxu1 %v330_v2  ;;  %318 = vmatpush3.bf16.msra.mxu0 %v335_v7 }
   0x8   :  { %307 = vmatprep.subr.bf16.mxu1 %v346_v0  ;;  %319 = vmatprep.subr.bf16.mxu0 %v346_v0  ;;  %v167_v31 = vld [vmem:[#allocation2] sm:$0xff]  ;;  %v168_v35 = vld [vmem:[#allocation2 + $0x8] sm:$0xff] }
   0xa   :  { %304 = vmatmul.mubr.msk.bf16.vlgmr.msra.gmra.mxu1 %vm22_vm0, %v331_v3 }
   0xb   :  { %308 = vmatpush3.bf16.msra.mxu1 %v332_v4  ;;  %311 = vmatprep.mubr.msk.bf16.mxu1 %vm347_vm1, %v346_v0 }
   0xc   :  { %309 = vmatprep.subr.bf16.mxu1 %v346_v0  ;;  %320 = vmatpush3.bf16.msra.mxu0 %v336_v8 }
   0xd   :  { %321 = vmatprep.subr.bf16.mxu0 %v346_v0 }
   0xf   :  { %310 = vmatpush3.bf16.msra.mxu1 %v333_v5 }
  0x10   :  { %322 = vmatpush3.bf16.msra.mxu0 %v337_v9 }
  0x12   :  { %312 = vmatmul.mubr.msk.bf16.vlgmr.msra.gmra.mxu1 %vm22_vm0, %v331_v3 }
  0xca   :  { %v86_v10 = vpop.f32.mrf.mxu1 }
  0xcc   :  { %v305_v11 = vpop.f32.mrf.mxu1 }
  0xce   :  { %v89_v12 = vpop.f32.mrf.mxu1 }
  0xd0   :  { %v306_v13 = vpop.f32.mrf.mxu1 }
  0xd2   :  { %v143_v14 = vpop.f32.mrf.mxu1 }
  0xd3   :  { %v277_v15 = vmul.f32 -1.442695, %v143_v14 }
  0xd4   :  { %v313_v16 = vpop.f32.mrf.mxu1 }
  0xd5   :  { %338 = vpow2.f32 %v277_v15 }
  0xd6   :  { %v146_v17 = vpop.f32.mrf.mxu1 }
  0xd7   :  { %v278_v18 = vmul.f32 -1.442695, %v146_v17 }
  0xd8   :  { %v314_v19 = vpop.f32.mrf.mxu1 }
  0xd9   :  { %340 = vpow2.f32 %v278_v18 }
  0xe2   :  { %v339_v20 = vpop.eup %338 }
  0xe3   :  { %v156_v21 = vadd.f32 1.0, %v339_v20 }
  0xe5   :  { %342 = vrcp.f32 %v156_v21 }
  0xe6   :  { %v341_v22 = vpop.eup %340 }
  0xe7   :  { %v157_v23 = vadd.f32 1.0, %v341_v22 }
  0xe9   :  { %344 = vrcp.f32 %v157_v23 }
  0xf2   :  { %v343_v24 = vpop.eup %342 }
  0xf3   :  { %v162_v25 = vmul.f32 %v343_v24, %v143_v14 }
  0xf5   :  { %v164_v28 = vmul.f32 %v162_v25, %v86_v10 }
  0xf6   :  { %v345_v26 = vpop.eup %344 }
  0xf7   :  { %v163_v27 = vmul.f32 %v345_v26, %v146_v17 }
  0xf9   :  { %v165_v29 = vmul.f32 %v163_v27, %v89_v12 }
  0xfb   :  { %v166_v30 = vpack.c.bf16 %v165_v29, %v164_v28 }
  0xfd   :  { %324 = vmatmul.mubr.msk.bf16.vlgmr.msra.gmra.mxu0 %vm201_vm2, %v166_v30 }
 0x1bd   :  { %v239_v32 = vpop.f32.mrf.mxu0 }
 0x1be   :  { %v246_v33 = vadd.f32 %v239_v32, %v167_v31 }
 0x1bf   :  { %v325_v34 = vpop.f32.mrf.mxu0 }
 0x1c0   :  { %248 = vst.msk [vmem:[#allocation2] sm:$0xff] %vm22_vm0, %v246_v33 }
 0x1c1   :  { %v242_v36 = vpop.f32.mrf.mxu0 }
 0x1c2   :  { %v247_v37 = vadd.f32 %v242_v36, %v168_v35 }
 0x1c3   :  { %v326_v38 = vpop.f32.mrf.mxu0 }
 0x1c4   :  { %249 = vst.msk [vmem:[#allocation2 + $0x8] sm:$0xff] %vm22_vm0, %v247_v37 }
 0x1c7   :  { %v253_v39 = vld [vmem:[#allocation2] sm:$0xff] }
 0x1c8   :  { %v286_v40 = vpack.c.bf16 %v253_v39, %v253_v39 }
 0x1ca   :  { %264 = vst.msk [vmem:[%s419_s4] sm:$0xf] %vm263_vm3, %v286_v40 }
 0x1cb   :  { %v254_v41 = vld [vmem:[#allocation2 + $0x8] sm:$0xff] }
 0x1cc   :  { %v287_v42 = vpack.c.bf16 %v254_v41, %v254_v41 }
 0x1ce   :  { %265 = vst.msk [vmem:[%s419_s4 + $0x4] sm:$0xf] %vm263_vm3, %v287_v42 }

// kernel: moe_lora_qwen_mlp_forward.3
= control target key start
LH: loop header
LB: loop body
LE: loop exit
PB: predicated region body
PF: predicated region fallthrough
CT: control target
= control target key end

     0   :  { %v1483_v1 = vmov 0.0   ;;  %vm1484_vm0 = vmmov 0   ;;  %vm190_vm1 = vcmask 1043456   ;;  %vm57_vm2 = vcmask 261120   ;;  %s1740_s0 = inlined_call_operand.vmem [shape: bf16[16,32], index: 0, kind: input, shape index: {}]   ;;  %s1741_s1 = inlined_call_operand.vmem [shape: bf16[16,32], index: 1, kind: input, shape index: {}]   ;;  %s1742_s2 = inlined_call_operand.vmem [shape: f32[16,128], index: 2, kind: input, shape index: {}]   ;;  %s1743_s3 = inlined_call_operand.vmem [shape: bf16[32,32], index: 3, kind: input, shape index: {}]   ;;  %s1744_s4 = inlined_call_operand.vmem [shape: bf16[32,64], index: 4, kind: input, shape index: {}]   ;;  %s1745_s5 = inlined_call_operand.vmem [shape: bf16[32,32], index: 5, kind: input, shape index: {}]   ;;  %s1746_s6 = inlined_call_operand.vmem [shape: bf16[32,64], index: 6, kind: input, shape index: {}]   ;;  %s1747_s7 = inlined_call_operand.vmem [shape: bf16[64,32], index: 7, kind: input, shape index: {}]   ;;  %s1748_s8 = inlined_call_operand.vmem [shape: bf16[32,32], index: 8, kind: input, shape index: {}]   ;;  %s1749_s9 = inlined_call_operand.hbm [shape: bf16[16,32], index: 9, kind: output, shape index: {}]  }
   0x1   :  { %v1420_v0 = vld [vmem:[%s1743_s3 + $0x8] sm:$0xff]   ;;  %1264 = vmatprep.subr.bf16.mxu0 %v1483_v1  ;;  %1272 = vmatprep.subr.bf16.mxu1 %v1483_v1  ;;  %v1422_v3 = vld [vmem:[%s1743_s3] sm:$0xff]   ;;  %v1485_v6 = vmov 0  }
   0x2   :  { %v1421_v2 = vld [vmem:[%s1745_s5 + $0x8] sm:$0xff]   ;;  %1265 = vmatpush3.bf16.msra.mxu0 %v1420_v0  ;;  %1268 = vmatprep.mubr.msk.bf16.mxu0 %vm1484_vm0, %v1483_v1  ;;  %v1423_v4 = vld [vmem:[%s1745_s5] sm:$0xff]  }
   0x3   :  { %1273 = vmatpush3.bf16.msra.mxu1 %v1421_v2  ;;  %1266 = vmatprep.subr.bf16.mxu0 %v1483_v1  ;;  %v1424_v5 = vld [vmem:[%s1740_s0] sm:$0xff]   ;;  %v180_v7 = vld [vmem:[%s1742_s2 + $0x8] sm:$0xff] }
   0x4   :  { %1274 = vmatprep.subr.bf16.mxu1 %v1483_v1  ;;  %1276 = vmatprep.mubr.msk.bf16.mxu1 %vm1484_vm0, %v1483_v1  ;;  %v163_v8 = vld [vmem:[%s1746_s6] sm:$0xf]  ;;  %v1574_v9 = vmul.f32 2.0, %v180_v7 }
   0x5   :  { %1413 = vset.pattern.permute.xlu1 %v1485_v6  ;;  %1412 = vset.pattern.permute.xlu0 %v1485_v6  ;;  %v242_v10 = vsel %vm190_vm1, %v163_v8, 0 }
   0x6   :  { %1267 = vmatpush3.bf16.msra.mxu0 %v1422_v3  ;;  %382 = vperm.xlu1 %1413, %v1574_v9  }
   0x7   :  { %1275 = vmatpush3.bf16.msra.mxu1 %v1423_v4  ;;  %1280 = vmatprep.subr.bf16.mxu0 %v1483_v1 }
   0x8   :  { %1286 = vmatprep.subr.bf16.mxu1 %v1483_v1 }
   0x9   :  { %14 = vsyncpa [#allocation3], 0  ;;  %1269 = vmatmul.mubr.msk.bf16.vlgmr.msra.gmra.mxu0 %vm57_vm2, %v1424_v5  ;;  %v1486_v11 = vmov 1   ;;  %v159_v12 = vld [vmem:[%s1744_s4] sm:$0xf]  ;;  %vm186_vm3 = vcmask 64512  }
   0xa   :  { %1277 = vmatmul.mubr.msk.bf16.vlgmr.msra.gmra.mxu1 %vm57_vm2, %v1424_v5  ;;  %1282 = vmatprep.mubr.msk.bf16.mxu0 %vm1484_vm0, %v1483_v1  ;;  %v192_v13 = vsel %vm190_vm1, %v159_v12, 0  ;;  %v179_v21 = vld [vmem:[%s1742_s2] sm:$0xff]  ;;  %s1487_s24 = smov 120   ;;  %v1425_v25 = vld [vmem:[%s1747_s7 + $0x18] sm:$0xff]   ;;  %v1426_v27 = vld [vmem:[%s1747_s7 + $0x10] sm:$0xff]   ;;  %s1488_s11 = smov 112  }
   0xb   :  { %1287 = vmatpush3.bf16.msra.mxu1 %v242_v10  ;;  %1288 = vmatprep.mubr.msk.bf16.mxu1 %vm1484_vm0, %v1483_v1  ;;  %v1598_v26 = vmul.f32 2.0, %v179_v21  ;;  %v1427_v28 = vld [vmem:[%s1747_s7 + $0x8] sm:$0xff]   ;;  %v1428_v29 = vld [vmem:[%s1747_s7] sm:$0xff]   ;;  %v1489_v30 = vmov 2   ;;  %s1490_s7 = smov 104   ;;  %vm328_vm4 = vcmask 523264  }
   0xc   :  { %1304 = vmatprep.subr.bf16.mxu1 %v1483_v1  ;;  %1415 = vset.pattern.permute.xlu1 %v1486_v11  ;;  %v164_v55 = vld [vmem:[%s1746_s6 + $0x4] sm:$0xf]  ;;  %v175_v61 = vld [vmem:[%s1748_s8] sm:$0xf]  ;;  %vm1152_vm5 = vcmask 257024  }
   0xd   :  { %1281 = vmatpush3.bf16.msra.mxu0 %v192_v13  ;;  %v496_v59 = vsel %vm190_vm1, %v164_v55, 0  ;;  %v392_v62 = vsel %vm190_vm1, %v175_v61, 0  ;;  %v160_v5 = vld [vmem:[%s1744_s4 + $0x4] sm:$0xf] }
   0xe   :  { %1292 = vmatprep.subr.bf16.mxu0 %v1483_v1 }
  0x81   :  { %v383_v2 = vpop.permute.xlu1 %382 }
  0xc9   :  { %v95_v14 = vpop.f32.mrf.mxu0 }
  0xca   :  { %v152_v15 = vpop.f32.mrf.mxu1 }
  0xcb   :  { %v1270_v16 = vpop.f32.mrf.mxu0 }
  0xcc   :  { %v1278_v17 = vpop.f32.mrf.mxu1 }
  0xcd   :  { %v98_v18 = vpop.f32.mrf.mxu0 }
  0xce   :  { %v185_v19 = vpack.c.bf16 %v98_v18, %v95_v14  ;;  %v155_v20 = vpop.f32.mrf.mxu1 }
  0xcf   :  { %v237_v22 = vpack.c.bf16 %v155_v20, %v152_v15  ;;  %v1271_v23 = vpop.f32.mrf.mxu0 }
  0xd0   :  { %v1279_v24 = vpop.f32.mrf.mxu1  ;;  %438 = vrot.lane.b32.xlu1 %v185_v19, %s1487_s24  ;;  %1283 = vmatmul.mubr.msk.bf16.vlgmr.msra.gmra.mxu0 %vm186_vm3, %v185_v19 }
  0xd1   :  { %490 = vrot.lane.b32.xlu0 %v237_v22, %s1487_s24  ;;  %1289 = vmatmul.mubr.msk.bf16.vlgmr.msra.gmra.mxu1 %vm186_vm3, %v237_v22 }
  0xd2   :  { %1293 = vmatpush3.bf16.msra.mxu0 %v1425_v25  ;;  %1300 = vmatprep.mubr.msk.bf16.mxu0 %vm1484_vm0, %v1483_v1 }
  0xd3   :  { %1294 = vmatprep.subr.bf16.mxu0 %v1483_v1  ;;  %1306 = vmatprep.mubr.msk.bf16.mxu1 %vm1484_vm0, %v1483_v1 }
  0xd4   :  { %564 = vrot.lane.b32.xlu1 %v1425_v25, %s1487_s24  ;;  %1305 = vmatpush3.bf16.msra.mxu1 %v392_v62 }
  0xd5   :  { %377 = vperm.xlu0 %1412, %v1598_v26   ;;  %1310 = vmatprep.subr.bf16.mxu1 %v1483_v1 }
  0xd6   :  { %1295 = vmatpush3.bf16.msra.mxu0 %v1426_v27 }
  0xd7   :  { %1296 = vmatprep.subr.bf16.mxu0 %v1483_v1 }
  0xd8   :  { %560 = vrot.lane.b32.xlu1 %v1427_v28, %s1487_s24 }
  0xd9   :  { %562 = vrot.lane.b32.xlu0 %v1426_v27, %s1487_s24 }
  0xda   :  { %1414 = vset.pattern.permute.xlu0 %v1486_v11  ;;  %1297 = vmatpush3.bf16.msra.mxu0 %v1427_v28  ;;  %v444_v11 = vsel %vm190_vm1, %v160_v5, 0 }
  0xdb   :  { %1298 = vmatprep.subr.bf16.mxu0 %v1483_v1 }
  0xdc   :  { %725 = vrot.lane.b32.xlu1 %v237_v22, %s1488_s11 }
  0xdd   :  { %558 = vrot.lane.b32.xlu0 %v1428_v29, %s1487_s24 }
  0xde   :  { %1299 = vmatpush3.bf16.msra.mxu0 %v1428_v29 }
  0xdf   :  { %1316 = vmatprep.subr.bf16.mxu0 %v1483_v1 }
  0xe0   :  { %619 = vperm.xlu1 %1415, %v1574_v9  }
  0xe1   :  { %615 = vperm.xlu0 %1414, %v1598_v26  }
  0xe4   :  { %674 = vrot.lane.b32.xlu1 %v185_v19, %s1488_s11 }
  0xe5   :  { %799 = vrot.lane.b32.xlu0 %v1425_v25, %s1488_s11  ;;  %1416 = vset.pattern.permute.xlu1 %v1489_v30 }
  0xe6   :  { %1417 = vset.pattern.permute.xlu0 %v1489_v30 }
  0xe8   :  { %797 = vrot.lane.b32.xlu1 %v1426_v27, %s1488_s11 }
  0xe9   :  { %795 = vrot.lane.b32.xlu0 %v1427_v28, %s1488_s11 }
  0xec   :  { %793 = vrot.lane.b32.xlu1 %v1428_v29, %s1488_s11 }
  0xed   :  { %960 = vrot.lane.b32.xlu0 %v237_v22, %s1490_s7 }
  0xf0   :  { %850 = vperm.xlu1 %1416, %v1598_v26  }
  0xf1   :  { %854 = vperm.xlu0 %1417, %v1574_v9  }
  0xf4   :  { %909 = vrot.lane.b32.xlu1 %v185_v19, %s1490_s7 }
  0xf5   :  { %1032 = vrot.lane.b32.xlu0 %v1426_v27, %s1490_s7 }
  0xf8   :  { %1034 = vrot.lane.b32.xlu1 %v1425_v25, %s1490_s7 }
  0xf9   :  { %1028 = vrot.lane.b32.xlu0 %v1428_v29, %s1490_s7 }
  0xfc   :  { %1030 = vrot.lane.b32.xlu1 %v1427_v28, %s1490_s7 }
 0x142   :  { %v439_v14 = vpop.permute.xlu1 %438 }
 0x143   :  { %v491_v60 = vpop.permute.xlu0 %490 }
 0x146   :  { %v565_v17 = vpop.permute.xlu1 %564 }
 0x14a   :  { %v561_v19 = vpop.permute.xlu1 %560 }
 0x150   :  { %v378_v3 = vpop.permute.xlu0 %377 }
 0x154   :  { %v563_v18 = vpop.permute.xlu0 %562 }
 0x158   :  { %v559_v20 = vpop.permute.xlu0 %558 }
 0x190   :  { %v228_v31 = vpop.f32.mrf.mxu0 }
 0x191   :  { %v278_v32 = vpop.f32.mrf.mxu1  ;;  %v235_v53 = vmul.f32 2.0, %v228_v31 }
 0x192   :  { %v1180_v33 = vmul.f32 -2.0, %v278_v32  ;;  %v1284_v34 = vpop.f32.mrf.mxu0  ;;  %v285_v48 = vmul.f32 2.0, %v278_v32 }
 0x193   :  { %v1290_v35 = vpop.f32.mrf.mxu1 }
 0x194   :  { %v289_v36 = vmul.f32 1.442695, %v1180_v33  ;;  %v231_v37 = vpop.f32.mrf.mxu0 }
 0x195   :  { %v281_v38 = vpop.f32.mrf.mxu1  ;;  %v236_v54 = vmul.f32 2.0, %v231_v37 }
 0x196   :  { %1429 = vpow2.f32 %v289_v36  ;;  %v1181_v39 = vmul.f32 -2.0, %v281_v38  ;;  %v1285_v40 = vpop.f32.mrf.mxu0  ;;  %v286_v50 = vmul.f32 2.0, %v281_v38 }
 0x197   :  { %v1291_v41 = vpop.f32.mrf.mxu1 }
 0x198   :  { %v291_v42 = vmul.f32 1.442695, %v1181_v39 }
 0x19a   :  { %1431 = vpow2.f32 %v291_v42 }
 0x1a3   :  { %v1430_v43 = vpop.eup %1429 }
 0x1a4   :  { %v293_v44 = vadd.f32 1.0, %v1430_v43 }
 0x1a6   :  { %1433 = vrcp.f32 %v293_v44 }
 0x1a7   :  { %v1432_v45 = vpop.eup %1431 }
 0x1a8   :  { %v294_v46 = vadd.f32 1.0, %v1432_v45 }
 0x1aa   :  { %1435 = vrcp.f32 %v294_v46  ;;  %v165_v46 = vld [vmem:[%s1746_s6 + $0x8] sm:$0xf] }
 0x1b3   :  { %v1434_v47 = vpop.eup %1433 }
 0x1b4   :  { %v299_v49 = vmul.f32 %v1434_v47, %v285_v48 }
 0x1b6   :  { %v301_v56 = vmul.f32 %v299_v49, %v235_v53 }
 0x1b7   :  { %v1436_v51 = vpop.eup %1435 }
 0x1b8   :  { %v300_v52 = vmul.f32 %v1436_v51, %v286_v50  ;;  %v731_v50 = vsel %vm190_vm1, %v165_v46, 0  ;;  %v726_v51 = vpop.permute.xlu1 %725 }
 0x1ba   :  { %v302_v57 = vmul.f32 %v300_v52, %v236_v54  ;;  %v176_v52 = vld [vmem:[%s1748_s8 + $0x4] sm:$0xf] }
 0x1bb   :  { %v629_v53 = vsel %vm190_vm1, %v176_v52, 0 }
 0x1bc   :  { %v303_v58 = vpack.c.bf16 %v302_v57, %v301_v56  ;;  %v620_v56 = vpop.permute.xlu1 %619  ;;  %v616_v57 = vpop.permute.xlu0 %615 }
 0x1be   :  { %1301 = vmatmul.mubr.msk.bf16.vlgmr.msra.gmra.mxu0 %vm328_vm4, %v303_v58 }
 0x1bf   :  { %1317 = vmatpush3.bf16.msra.mxu0 %v496_v59  ;;  %1318 = vmatprep.mubr.msk.bf16.mxu0 %vm1484_vm0, %v1483_v1  ;;  %v161_v59 = vld [vmem:[%s1744_s4 + $0x8] sm:$0xf] }
 0x1c0   :  { %1334 = vmatprep.subr.bf16.mxu0 %v1483_v1 }
 0x1c6   :  { %1319 = vmatmul.mubr.msk.bf16.vlgmr.msra.gmra.mxu0 %vm186_vm3, %v491_v60 }
 0x1c7   :  { %1336 = vmatprep.mubr.msk.bf16.mxu0 %vm1484_vm0, %v1483_v1  ;;  %1335 = vmatpush3.bf16.msra.mxu0 %v629_v53 }
 0x1c8   :  { %1340 = vmatprep.subr.bf16.mxu0 %v1483_v1 }
 0x27e   :  { %v366_v63 = vpop.f32.mrf.mxu0 }
 0x27f   :  { %v385_v6 = vmul.f32 %v378_v3, %v366_v63 }
 0x280   :  { %v1302_v0 = vpop.f32.mrf.mxu0 }
 0x281   :  { %v680_v0 = vsel %vm190_vm1, %v161_v59, 0 }
 0x282   :  { %v369_v4 = vpop.f32.mrf.mxu0 }
 0x283   :  { %v386_v7 = vmul.f32 %v383_v2, %v369_v4 }
 0x284   :  { %v1303_v8 = vpop.f32.mrf.mxu0 }
 0x285   :  { %v387_v10 = vpack.c.bf16 %v386_v7, %v385_v6  ;;  %v675_v6 = vpop.permute.xlu1 %674  ;;  %v800_v7 = vpop.permute.xlu0 %799 }
 0x286   :  { %v532_v12 = vpop.f32.mrf.mxu0 }
 0x287   :  { %1307 = vmatmul.mubr.msk.bf16.vlgmr.msra.gmra.mxu1 %vm186_vm3, %v387_v10  ;;  %v1190_v21 = vmul.f32 -2.0, %v532_v12  ;;  %v539_v38 = vmul.f32 2.0, %v532_v12 }
 0x288   :  { %1311 = vmatpush3.bf16.msra.mxu1 %v444_v11  ;;  %v1320_v13 = vpop.f32.mrf.mxu0  ;;  %1312 = vmatprep.mubr.msk.bf16.mxu1 %vm1484_vm0, %v1483_v1 }
 0x289   :  { %1322 = vmatprep.subr.bf16.mxu1 %v1483_v1  ;;  %v543_v23 = vmul.f32 1.442695, %v1190_v21  ;;  %v798_v8 = vpop.permute.xlu1 %797  ;;  %v796_v10 = vpop.permute.xlu0 %795 }
 0x28a   :  { %v535_v15 = vpop.f32.mrf.mxu0 }
 0x28b   :  { %v1191_v22 = vmul.f32 -2.0, %v535_v15  ;;  %1437 = vpow2.f32 %v543_v23  ;;  %v540_v39 = vmul.f32 2.0, %v535_v15 }
 0x28c   :  { %v1321_v16 = vpop.f32.mrf.mxu0 }
 0x28d   :  { %v545_v24 = vmul.f32 1.442695, %v1191_v22  ;;  %v794_v11 = vpop.permute.xlu1 %793 }
 0x28f   :  { %1313 = vmatmul.mubr.msk.bf16.vlgmr.msra.gmra.mxu1 %vm186_vm3, %v439_v14  ;;  %1439 = vpow2.f32 %v545_v24 }
 0x290   :  { %1323 = vmatpush3.bf16.msra.mxu1 %v565_v17  ;;  %1330 = vmatprep.mubr.msk.bf16.mxu1 %vm1484_vm0, %v1483_v1 }
 0x291   :  { %1324 = vmatprep.subr.bf16.mxu1 %v1483_v1 }
 0x294   :  { %1325 = vmatpush3.bf16.msra.mxu1 %v563_v18  ;;  %v1211_v18 = vld [vmem:[%s1741_s1] sm:$0xff]  }
 0x295   :  { %1326 = vmatprep.subr.bf16.mxu1 %v1483_v1  ;;  %v1212_v21 = vunpack.c.l.bf16 %v1211_v18  ;;  %v1213_v23 = vunpack.c.h.bf16 %v1211_v18 }
 0x298   :  { %1327 = vmatpush3.bf16.msra.mxu1 %v561_v19  ;;  %v1438_v25 = vpop.eup %1437 }
 0x299   :  { %1328 = vmatprep.subr.bf16.mxu1 %v1483_v1  ;;  %v547_v28 = vadd.f32 1.0, %v1438_v25 }
 0x29b   :  { %1441 = vrcp.f32 %v547_v28 }
 0x29c   :  { %1329 = vmatpush3.bf16.msra.mxu1 %v559_v20  ;;  %v1440_v27 = vpop.eup %1439 }
 0x29d   :  { %1346 = vmatprep.subr.bf16.mxu1 %v1483_v1  ;;  %v548_v29 = vadd.f32 1.0, %v1440_v27 }
 0x29f   :  { %1443 = vrcp.f32 %v548_v29 }
 0x2a8   :  { %v1442_v35 = vpop.eup %1441 }
 0x2a9   :  { %v553_v42 = vmul.f32 %v1442_v35, %v539_v38 }
 0x2ac   :  { %v1444_v36 = vpop.eup %1443 }
 0x2ad   :  { %v554_v43 = vmul.f32 %v1444_v36, %v540_v39 }
 0x347   :  { %v1653_v30 = vpop.f32.mrf.mxu1 }
 0x348   :  { %v435_v22 = vadd.f32 %v1212_v21, %v1653_v30 }
 0x349   :  { %v1308_v31 = vpop.f32.mrf.mxu1 }
 0x34b   :  { %v1655_v32 = vpop.f32.mrf.mxu1 }
 0x34c   :  { %v436_v28 = vadd.f32 %v1213_v23, %v1655_v32  ;;  %v166_v32 = vld [vmem:[%s1746_s6 + $0xc] sm:$0xf] }
 0x34d   :  { %v1309_v33 = vpop.f32.mrf.mxu1 }
 0x34f   :  { %v480_v34 = vpop.f32.mrf.mxu1 }
 0x350   :  { %v487_v40 = vmul.f32 2.0, %v480_v34 }
 0x351   :  { %v1314_v37 = vpop.f32.mrf.mxu1 }
 0x352   :  { %v555_v47 = vmul.f32 %v553_v42, %v487_v40 }
 0x353   :  { %v483_v41 = vpop.f32.mrf.mxu1 }
 0x354   :  { %v488_v44 = vmul.f32 2.0, %v483_v41 }
 0x355   :  { %v1315_v45 = vpop.f32.mrf.mxu1 }
 0x356   :  { %v556_v48 = vmul.f32 %v554_v43, %v488_v44 }
 0x358   :  { %v557_v49 = vpack.c.bf16 %v556_v48, %v555_v47  ;;  %v966_v48 = vsel %vm190_vm1, %v166_v32, 0 }
 0x35a   :  { %1331 = vmatmul.mubr.msk.bf16.vlgmr.msra.gmra.mxu1 %vm328_vm4, %v557_v49  ;;  %v961_v49 = vpop.permute.xlu0 %960 }
 0x35b   :  { %1347 = vmatpush3.bf16.msra.mxu1 %v731_v50  ;;  %1348 = vmatprep.mubr.msk.bf16.mxu1 %vm1484_vm0, %v1483_v1  ;;  %v177_v50 = vld [vmem:[%s1748_s8 + $0x8] sm:$0xf] }
 0x35c   :  { %1364 = vmatprep.subr.bf16.mxu1 %v1483_v1 }
 0x362   :  { %1349 = vmatmul.mubr.msk.bf16.vlgmr.msra.gmra.mxu1 %vm186_vm3, %v726_v51  ;;  %v864_v51 = vsel %vm190_vm1, %v177_v50, 0 }
 0x363   :  { %1366 = vmatprep.mubr.msk.bf16.mxu1 %vm1484_vm0, %v1483_v1  ;;  %1365 = vmatpush3.bf16.msra.mxu1 %v864_v51 }
 0x364   :  { %1370 = vmatprep.subr.bf16.mxu1 %v1483_v1 }
 0x41a   :  { %v607_v54 = vpop.f32.mrf.mxu1 }
 0x41b   :  { %v622_v60 = vmul.f32 %v616_v57, %v607_v54  ;;  %v855_v54 = vpop.permute.xlu0 %854  ;;  %v162_v57 = vld [vmem:[%s1744_s4 + $0xc] sm:$0xf] }
 0x41c   :  { %v1332_v55 = vpop.f32.mrf.mxu1 }
 0x41d   :  { %v851_v55 = vpop.permute.xlu1 %850 }
 0x41e   :  { %v610_v58 = vpop.f32.mrf.mxu1 }
 0x41f   :  { %v623_v61 = vmul.f32 %v620_v56, %v610_v58 }
 0x420   :  { %v1333_v62 = vpop.f32.mrf.mxu1 }
 0x421   :  { %v624_v63 = vpack.c.bf16 %v623_v61, %v622_v60  ;;  %v915_v62 = vsel %vm190_vm1, %v162_v57, 0 }
 0x422   :  { %v767_v2 = vpop.f32.mrf.mxu1 }
 0x423   :  { %1337 = vmatmul.mubr.msk.bf16.vlgmr.msra.gmra.mxu0 %vm186_vm3, %v624_v63  ;;  %v1196_v12 = vmul.f32 -2.0, %v767_v2  ;;  %v774_v38 = vmul.f32 2.0, %v767_v2 }
 0x424   :  { %1341 = vmatpush3.bf16.msra.mxu0 %v680_v0  ;;  %v1350_v3 = vpop.f32.mrf.mxu1  ;;  %1342 = vmatprep.mubr.msk.bf16.mxu0 %vm1484_vm0, %v1483_v1 }
 0x425   :  { %1352 = vmatprep.subr.bf16.mxu0 %v1483_v1  ;;  %v778_v14 = vmul.f32 1.442695, %v1196_v12 }
 0x426   :  { %v770_v4 = vpop.f32.mrf.mxu1 }
 0x427   :  { %v1197_v13 = vmul.f32 -2.0, %v770_v4  ;;  %1445 = vpow2.f32 %v778_v14  ;;  %v775_v39 = vmul.f32 2.0, %v770_v4  ;;  %v910_v4 = vpop.permute.xlu1 %909 }
 0x428   :  { %v1351_v5 = vpop.f32.mrf.mxu1 }
 0x429   :  { %v780_v15 = vmul.f32 1.442695, %v1197_v13 }
 0x42b   :  { %1343 = vmatmul.mubr.msk.bf16.vlgmr.msra.gmra.mxu0 %vm186_vm3, %v675_v6  ;;  %1447 = vpow2.f32 %v780_v15  ;;  %v1035_v5 = vpop.permute.xlu1 %1034  ;;  %v1033_v6 = vpop.permute.xlu0 %1032 }
 0x42c   :  { %1353 = vmatpush3.bf16.msra.mxu0 %v800_v7  ;;  %1360 = vmatprep.mubr.msk.bf16.mxu0 %vm1484_vm0, %v1483_v1 }
 0x42d   :  { %1354 = vmatprep.subr.bf16.mxu0 %v1483_v1 }
 0x42f   :  { %v1031_v7 = vpop.permute.xlu1 %1030 }
 0x430   :  { %1355 = vmatpush3.bf16.msra.mxu0 %v798_v8  ;;  %v1029_v8 = vpop.permute.xlu0 %1028 }
 0x431   :  { %1356 = vmatprep.subr.bf16.mxu0 %v1483_v1 }
 0x434   :  { %1357 = vmatpush3.bf16.msra.mxu0 %v796_v10  ;;  %v1446_v16 = vpop.eup %1445  ;;  %v1491_v10 = vmov 3  }
 0x435   :  { %1358 = vmatprep.subr.bf16.mxu0 %v1483_v1  ;;  %v782_v19 = vadd.f32 1.0, %v1446_v16  ;;  %1418 = vset.pattern.permute.xlu1 %v1491_v10 }
 0x436   :  { %1419 = vset.pattern.permute.xlu0 %v1491_v10  ;;  %1085 = vperm.xlu1 %1418, %v1598_v26  }
 0x437   :  { %1449 = vrcp.f32 %v782_v19  ;;  %1089 = vperm.xlu0 %1419, %v1574_v9  }
 0x438   :  { %1359 = vmatpush3.bf16.msra.mxu0 %v794_v11  ;;  %v1448_v17 = vpop.eup %1447 }
 0x439   :  { %1376 = vmatprep.subr.bf16.mxu0 %v1483_v1  ;;  %v783_v20 = vadd.f32 1.0, %v1448_v17 }
 0x43b   :  { %1451 = vrcp.f32 %v783_v20 }
 0x444   :  { %v1450_v35 = vpop.eup %1449 }
 0x445   :  { %v788_v30 = vmul.f32 %v1450_v35, %v774_v38 }
 0x448   :  { %v1452_v36 = vpop.eup %1451 }
 0x449   :  { %v789_v42 = vmul.f32 %v1452_v36, %v775_v39 }
 0x4e3   :  { %v665_v24 = vpop.f32.mrf.mxu0 }
 0x4e4   :  { %v1692_v25 = vadd.f32 %v665_v24, %v435_v22 }
 0x4e5   :  { %v1338_v27 = vpop.f32.mrf.mxu0 }
 0x4e7   :  { %v668_v29 = vpop.f32.mrf.mxu0 }
 0x4e8   :  { %v1695_v31 = vadd.f32 %v668_v29, %v436_v28 }
 0x4e9   :  { %v1339_v33 = vpop.f32.mrf.mxu0 }
 0x4eb   :  { %v716_v34 = vpop.f32.mrf.mxu0 }
 0x4ec   :  { %v723_v40 = vmul.f32 2.0, %v716_v34 }
 0x4ed   :  { %v1344_v37 = vpop.f32.mrf.mxu0 }
 0x4ee   :  { %v790_v45 = vmul.f32 %v788_v30, %v723_v40 }
 0x4ef   :  { %v719_v41 = vpop.f32.mrf.mxu0 }
 0x4f0   :  { %v724_v43 = vmul.f32 2.0, %v719_v41 }
 0x4f1   :  { %v1345_v44 = vpop.f32.mrf.mxu0 }
 0x4f2   :  { %v791_v46 = vmul.f32 %v789_v42, %v724_v43  ;;  %v1086_v42 = vpop.permute.xlu1 %1085  ;;  %v1090_v44 = vpop.permute.xlu0 %1089 }
 0x4f4   :  { %v792_v47 = vpack.c.bf16 %v791_v46, %v790_v45 }
 0x4f6   :  { %1361 = vmatmul.mubr.msk.bf16.vlgmr.msra.gmra.mxu0 %vm328_vm4, %v792_v47 }
 0x4f7   :  { %1377 = vmatpush3.bf16.msra.mxu0 %v966_v48  ;;  %1378 = vmatprep.mubr.msk.bf16.mxu0 %vm1484_vm0, %v1483_v1 }
 0x4f8   :  { %1394 = vmatprep.subr.bf16.mxu0 %v1483_v1 }
 0x4fe   :  { %1379 = vmatmul.mubr.msk.bf16.vlgmr.msra.gmra.mxu0 %vm186_vm3, %v961_v49 }
 0x4ff   :  { %1396 = vmatprep.mubr.msk.bf16.mxu0 %vm1484_vm0, %v1483_v1 }
 0x5b6   :  { %v842_v52 = vpop.f32.mrf.mxu0 }
 0x5b7   :  { %v857_v58 = vmul.f32 %v851_v55, %v842_v52 }
 0x5b8   :  { %v1362_v53 = vpop.f32.mrf.mxu0 }
 0x5ba   :  { %v845_v56 = vpop.f32.mrf.mxu0 }
 0x5bb   :  { %v858_v59 = vmul.f32 %v855_v54, %v845_v56 }
 0x5bc   :  { %v1363_v60 = vpop.f32.mrf.mxu0 }
 0x5bd   :  { %v859_v61 = vpack.c.bf16 %v858_v59, %v857_v58 }
 0x5be   :  { %v1002_v63 = vpop.f32.mrf.mxu0 }
 0x5bf   :  { %1367 = vmatmul.mubr.msk.bf16.vlgmr.msra.gmra.mxu1 %vm186_vm3, %v859_v61  ;;  %v1202_v11 = vmul.f32 -2.0, %v1002_v63  ;;  %v1009_v28 = vmul.f32 2.0, %v1002_v63 }
 0x5c0   :  { %1371 = vmatpush3.bf16.msra.mxu1 %v915_v62  ;;  %v1380_v0 = vpop.f32.mrf.mxu0  ;;  %1372 = vmatprep.mubr.msk.bf16.mxu1 %vm1484_vm0, %v1483_v1 }
 0x5c1   :  { %1382 = vmatprep.subr.bf16.mxu1 %v1483_v1  ;;  %v1013_v13 = vmul.f32 1.442695, %v1202_v11 }
 0x5c2   :  { %v1005_v2 = vpop.f32.mrf.mxu0 }
 0x5c3   :  { %v1203_v12 = vmul.f32 -2.0, %v1005_v2  ;;  %1453 = vpow2.f32 %v1013_v13  ;;  %v1010_v29 = vmul.f32 2.0, %v1005_v2 }
 0x5c4   :  { %v1381_v3 = vpop.f32.mrf.mxu0 }
 0x5c5   :  { %v1015_v14 = vmul.f32 1.442695, %v1203_v12 }
 0x5c7   :  { %1373 = vmatmul.mubr.msk.bf16.vlgmr.msra.gmra.mxu1 %vm186_vm3, %v910_v4  ;;  %1455 = vpow2.f32 %v1015_v14 }
 0x5c8   :  { %1390 = vmatprep.mubr.msk.bf16.mxu1 %vm1484_vm0, %v1483_v1  ;;  %1383 = vmatpush3.bf16.msra.mxu1 %v1035_v5 }
 0x5c9   :  { %1384 = vmatprep.subr.bf16.mxu1 %v1483_v1 }
 0x5cc   :  { %1385 = vmatpush3.bf16.msra.mxu1 %v1033_v6 }
 0x5cd   :  { %1386 = vmatprep.subr.bf16.mxu1 %v1483_v1 }
 0x5d0   :  { %1387 = vmatpush3.bf16.msra.mxu1 %v1031_v7  ;;  %v1454_v15 = vpop.eup %1453 }
 0x5d1   :  { %1388 = vmatprep.subr.bf16.mxu1 %v1483_v1  ;;  %v1017_v17 = vadd.f32 1.0, %v1454_v15 }
 0x5d3   :  { %1457 = vrcp.f32 %v1017_v17 }
 0x5d4   :  { %1389 = vmatpush3.bf16.msra.mxu1 %v1029_v8  ;;  %v1456_v16 = vpop.eup %1455 }
 0x5d5   :  { %v1018_v18 = vadd.f32 1.0, %v1456_v16 }
 0x5d7   :  { %1459 = vrcp.f32 %v1018_v18 }
 0x5e0   :  { %v1458_v23 = vpop.eup %1457 }
 0x5e1   :  { %v1023_v35 = vmul.f32 %v1458_v23, %v1009_v28 }
 0x5e4   :  { %v1460_v24 = vpop.eup %1459 }
 0x5e5   :  { %v1024_v36 = vmul.f32 %v1460_v24, %v1010_v29 }
 0x67f   :  { %v900_v1 = vpop.f32.mrf.mxu1 }
 0x680   :  { %v907_v19 = vadd.f32 %v900_v1, %v1692_v25 }
 0x681   :  { %v1368_v20 = vpop.f32.mrf.mxu1 }
 0x683   :  { %v903_v21 = vpop.f32.mrf.mxu1 }
 0x684   :  { %v908_v26 = vadd.f32 %v903_v21, %v1695_v31  ;;  %v178_v31 = vld [vmem:[%s1748_s8 + $0xc] sm:$0xf]  ;;  %s1492_s8 = smov [#allocation2]  }
 0x685   :  { %v1369_v9 = vpop.f32.mrf.mxu1  ;;  %v1099_v41 = vsel %vm190_vm1, %v178_v31, 0  ;;  %s1160_s27 = sshll.u32 %s1492_s8, 4  ;;  %s1161_s27 = int_to_ptr.vmem [resolvable:$true] %s1160_s27 }
 0x686   :  { %1395 = vmatpush3.bf16.msra.mxu0 %v1099_v41  ;;  %s1461_s28 = scalar_lea.vmem %s1161_s27, 128  ;;  %p1466_p1 = scmp.lt.s32.totalorder %s1161_s27, %s1161_s27 }
 0x687   :  { %v951_v22 = vpop.f32.mrf.mxu1  ;;  %p1462_p0 = scmp.ne.s32.totalorder %s1161_s27, %s1461_s28  ;;  %p1467_p2 = scmp.lt.s32.totalorder %s1461_s28, %s1461_s28 }
 0x688   :  { %v958_v33 = vmul.f32 2.0, %v951_v22 }
 0x689   :  { %v1374_v27 = vpop.f32.mrf.mxu1  ;;  %p1468_p3 = por %p1467_p2, %p1466_p1 }
 0x68a   :  { %v1025_v39 = vmul.f32 %v1023_v35, %v958_v33 }
 0x68b   :  { %v954_v34 = vpop.f32.mrf.mxu1  ;;  %p1469_p4 = pnand %p1468_p3, %p1462_p0 }
 0x68c   :  { %v959_v37 = vmul.f32 2.0, %v954_v34 }
 0x68d   :  { %v1375_v38 = vpop.f32.mrf.mxu1 }
 0x68e   :  { %v1026_v40 = vmul.f32 %v1024_v36, %v959_v37 }
 0x690   :  { %v1027_v25 = vpack.c.bf16 %v1026_v40, %v1025_v39 }
 0x692   :  { %1391 = vmatmul.mubr.msk.bf16.vlgmr.msra.gmra.mxu1 %vm328_vm4, %v1027_v25 }
 0x752   :  { %v1077_v30 = vpop.f32.mrf.mxu1 }
 0x753   :  { %v1092_v45 = vmul.f32 %v1086_v42, %v1077_v30 }
 0x754   :  { %v1392_v43 = vpop.f32.mrf.mxu1 }
 0x756   :  { %v1080_v32 = vpop.f32.mrf.mxu1 }
 0x757   :  { %v1093_v46 = vmul.f32 %v1090_v44, %v1080_v32 }
 0x758   :  { %v1393_v47 = vpop.f32.mrf.mxu1 }
 0x759   :  { %v1094_v48 = vpack.c.bf16 %v1093_v46, %v1092_v45 }
 0x75b   :  { %1397 = vmatmul.mubr.msk.bf16.vlgmr.msra.gmra.mxu0 %vm186_vm3, %v1094_v48 }
 0x81b   :  { %v1135_v49 = vpop.f32.mrf.mxu0 }
 0x81c   :  { %v1142_v50 = vadd.f32 %v1135_v49, %v907_v19 }
 0x81d   :  { %v1398_v51 = vpop.f32.mrf.mxu0 }
 0x81e   :  { %v1208_v52 = vpack.c.bf16 %v1142_v50, %v1142_v50 }
 0x81f   :  { %v1138_v53 = vpop.f32.mrf.mxu0 }
 0x820   :  { %1153 = vst.msk [vmem:[#allocation2] sm:$0xf] %vm1152_vm5, %v1208_v52  ;;  %v1143_v54 = vadd.f32 %v1138_v53, %v908_v26 }
 0x821   :  { %v1399_v55 = vpop.f32.mrf.mxu0 }
 0x822   :  { %v1209_v56 = vpack.c.bf16 %v1143_v54, %v1143_v54 }
 0x824   :  { %1154 = vst.msk [vmem:[#allocation2 + $0x4] sm:$0xf] %vm1152_vm5, %v1209_v56 }
 0x825   :  { %1472 = shalt.err (!%p1469_p4)
}
 0x826   :  { %s1493_s29 = smov 64   ;;  %s1494_s30 = smov 4  }
 0x827   :  { %1166 = dma.vmem_to_hbm [thread:$0]  %s1161_s27, 128, %s1749_s9, [#allocation3], %s1493_s29, %s1493_s29, %s1494_s30  }
 0x828   :  { %1481 = dma.done.wait [#allocation3], 128  }
 0x829   :  { %1482 = vsyncadd [#allocation3], 4294967168 }
 0x82a   :  { %1170 = vsyncpa [#allocation3], 1 }

</bundles_post_ra>
